<compile_context>
chip_gen: v5e
topology: v5e:2x2
jax: 0.10.0
libtpu: 0.0.40
codegen_flags: <defaults>
</compile_context>

<pallas_src>
import functools

import jax
import jax.numpy as jnp
from jax.experimental import pallas as pl
from jax.experimental.pallas import tpu as pltpu

HIDDEN = 128
LN_EPS = 1e-5


def _round_up(x, m):
    return ((x + m - 1) // m) * m


def _dqn_kernel(x_ref,
                w1_ref, b1_ref, g1_ref, beta1_ref,
                w2_ref, b2_ref, g2_ref, beta2_ref,
                w3_ref, b3_ref,
                ones_ref,
                out_ref,
                *, compute_dtype):
    # (H, H) matrix filled with 1/H, resident in VMEM. Multiplying by it on
    # the MXU yields row means already broadcast across all 128 lanes, so the
    # LayerNorm needs no cross-lane (XLU) reductions and no lane broadcasts.
    ones_nn = ones_ref[...]

    def ln_relu(h, g, beta):
        hc = h.astype(compute_dtype)
        mu = jnp.dot(hc, ones_nn, preferred_element_type=jnp.float32)        # E[h],  lane-broadcast
        ms = jnp.dot((h * h).astype(compute_dtype), ones_nn,
                     preferred_element_type=jnp.float32)                      # E[h^2], lane-broadcast
        var = ms - mu * mu
        rstd = jax.lax.rsqrt(var + LN_EPS)
        return jnp.maximum((h - mu) * rstd * g + beta, 0.0)

    # TODO(synk): training-mode dropout (p=0.2) intentionally omitted (eval semantics).

    x = x_ref[...].astype(compute_dtype)

    # ---- fc1 + LayerNorm + ReLU ----
    h = jnp.dot(x, w1_ref[...], preferred_element_type=jnp.float32) + b1_ref[...]
    h = ln_relu(h, g1_ref[...], beta1_ref[...])

    # ---- fc2 + LayerNorm + ReLU ----
    h = jnp.dot(h.astype(compute_dtype), w2_ref[...],
                preferred_element_type=jnp.float32) + b2_ref[...]
    h = ln_relu(h, g2_ref[...], beta2_ref[...])

    # ---- fc3: compute a lane-aligned slab, store only the action_size lanes ----
    out = jnp.dot(h.astype(compute_dtype), w3_ref[...],
                  preferred_element_type=jnp.float32) + b3_ref[...]
    out_ref[...] = out[:, :out_ref.shape[1]].astype(out_ref.dtype)


def dqn_forward(x, params, *, block_batch=4096, compute_dtype=jnp.bfloat16):
    """x: (B, state_size) float32. params: dict of weights (see init_params).

    compute_dtype=bfloat16 (default) uses native MXU throughput on all
    generations; f32 accumulation and f32 LayerNorm statistics are preserved.
    Pass compute_dtype=jnp.float32 for bit-tighter numerics.
    """
    B, S = x.shape
    action_size = params["w3"].shape[1]
    a_pad = _round_up(action_size, 128)

    # ---- resident operands: pre-cast MXU weights once in the wrapper ----
    w1 = params["w1"].astype(compute_dtype)
    w2 = params["w2"].astype(compute_dtype)
    w3 = jnp.zeros((HIDDEN, a_pad), compute_dtype).at[:, :action_size].set(
        params["w3"].astype(compute_dtype))
    b3 = jnp.zeros((1, a_pad), jnp.float32).at[:, :action_size].set(params["b3"])
    ones_nn = jnp.full((HIDDEN, HIDDEN), 1.0 / HIDDEN, compute_dtype)

    # ---- batch tiling: near-even tiles (multiple of 8), pipelined over grid ----
    b8 = _round_up(B, 8)
    n_tiles = max(1, -(-b8 // max(8, block_batch)))
    if n_tiles == 1 and b8 >= 2048:
        # Keep >= 2 grid steps so the "parallel" batch axis can be sharded
        # across both TensorCores on v7x (harmless on v5e/v6e).
        n_tiles = 2
    tb = _round_up(-(-b8 // n_tiles), 8)
    b_pad = tb * n_tiles

    if b_pad != B:
        # Prefer B divisible by the tile (and by 8) to avoid this HBM copy.
        x = jnp.pad(x, ((0, b_pad - B), (0, 0)))
    grid = (n_tiles,)

    def resident(arr):
        # Constant index_map -> weights/biases/LN params stay VMEM-resident.
        # TODO(synk): pipeline_mode=pl.Buffered(1) would skip their pointless
        # double-buffering; left at default for lowering safety (low priority).
        return pl.BlockSpec(arr.shape, lambda i: (0, 0))

    args = (
        x,
        w1, params["b1"], params["g1"], params["beta1"],
        w2, params["b2"], params["g2"], params["beta2"],
        w3, b3,
        ones_nn,
    )

    in_specs = [pl.BlockSpec((tb, S), lambda i: (i, 0))] + [resident(a) for a in args[1:]]
    # Narrow (last dim == action_size) output block: full-dim minor block is
    # legal and cuts HBM writeback ~32x vs a 128-lane padded slab.
    out_specs = pl.BlockSpec((tb, action_size), lambda i: (i, 0))

    # v5e's default scoped-VMEM limit is only 16 MiB; raise it explicitly so
    # the large tile compiles there too (still far below physical VMEM).
    vmem_limit = int(min(100 * 2**20, max(48 * 2**20, 16 * tb * HIDDEN * 4)))

    out = pl.pallas_call(
        functools.partial(_dqn_kernel, compute_dtype=compute_dtype),
        out_shape=jax.ShapeDtypeStruct((b_pad, action_size), jnp.float32),
        grid=grid,
        in_specs=in_specs,
        out_specs=out_specs,
        compiler_params=pltpu.CompilerParams(
            dimension_semantics=("parallel",),
            vmem_limit_bytes=vmem_limit,
        ),
    )(*args)

    return out if b_pad == B else out[:B]


def init_params(key, state_size, action_size, hidden=HIDDEN):
    """Deterministic synthetic parameter init (PyTorch-style uniform fan-in bounds)."""
    ks = jax.random.split(key, 6)

    def linear(kw, kb, fan_in, fan_out):
        bound = 1.0 / (fan_in ** 0.5)
        # stored as (in, out) so kernel does x @ W + b
        w = jax.random.uniform(kw, (fan_in, fan_out), jnp.float32, -bound, bound)
        b = jax.random.uniform(kb, (1, fan_out), jnp.float32, -bound, bound)
        return w, b

    w1, b1 = linear(ks[0], ks[1], state_size, hidden)
    w2, b2 = linear(ks[2], ks[3], hidden, hidden)
    w3, b3 = linear(ks[4], ks[5], hidden, action_size)

    return {
        "w1": w1, "b1": b1,
        "g1": jnp.ones((1, hidden), jnp.float32), "beta1": jnp.zeros((1, hidden), jnp.float32),
        "w2": w2, "b2": b2,
        "g2": jnp.ones((1, hidden), jnp.float32), "beta2": jnp.zeros((1, hidden), jnp.float32),
        "w3": w3, "b3": b3,
    }


def dqn_reference(x, p):
    """Pure-JAX reference (highest-precision matmuls) for the correctness check."""
    hi = jax.lax.Precision.HIGHEST

    def ln(h, g, b):
        mu = jnp.mean(h, axis=-1, keepdims=True)
        var = jnp.mean((h - mu) ** 2, axis=-1, keepdims=True)
        return (h - mu) / jnp.sqrt(var + LN_EPS) * g + b

    h = jnp.dot(x, p["w1"], precision=hi) + p["b1"]
    h = jnp.maximum(ln(h, p["g1"], p["beta1"]), 0.0)
    h = jnp.dot(h, p["w2"], precision=hi) + p["b2"]
    h = jnp.maximum(ln(h, p["g2"], p["beta2"]), 0.0)
    return jnp.dot(h, p["w3"], precision=hi) + p["b3"]


if __name__ == "__main__":
    batch = 8
    state_size = 16
    action_size = 4

    key = jax.random.PRNGKey(0)
    k_x, k_p = jax.random.split(key)

    x = jax.random.normal(k_x, (batch, state_size), dtype=jnp.float32)
    params = init_params(k_p, state_size, action_size)

    ref = dqn_reference(x, params)

    # Tight correctness check with f32 MXU operands.
    out_f32 = jax.block_until_ready(dqn_forward(x, params, compute_dtype=jnp.float32))
    assert out_f32.shape == (batch, action_size), out_f32.shape
    err_f32 = jnp.max(jnp.abs(out_f32 - ref))
    assert jnp.allclose(out_f32, ref, atol=2e-4, rtol=2e-4), f"f32 max abs err {err_f32}"

    # Performance default: bf16 MXU operands (f32 accumulation / LN stats) -> looser tolerance.
    out_bf16 = jax.block_until_ready(dqn_forward(x, params))
    assert out_bf16.shape == (batch, action_size), out_bf16.shape
    err_bf16 = jnp.max(jnp.abs(out_bf16 - ref))
    assert jnp.allclose(out_bf16, ref, atol=5e-2, rtol=5e-2), f"bf16 max abs err {err_bf16}"

    print("KERNEL_OK")
</pallas_src>

<mosaic_0001>
module attributes {stable_mosaic.version = 11 : i64} {
  func.func @_dqn_kernel(%arg0: i32, %arg1: memref<8x16xf32, #tpu.memory_space<vmem>>, %arg2: memref<16x128xf32, #tpu.memory_space<vmem>>, %arg3: memref<1x128xf32, #tpu.memory_space<vmem>>, %arg4: memref<1x128xf32, #tpu.memory_space<vmem>>, %arg5: memref<1x128xf32, #tpu.memory_space<vmem>>, %arg6: memref<128x128xf32, #tpu.memory_space<vmem>>, %arg7: memref<1x128xf32, #tpu.memory_space<vmem>>, %arg8: memref<1x128xf32, #tpu.memory_space<vmem>>, %arg9: memref<1x128xf32, #tpu.memory_space<vmem>>, %arg10: memref<128x128xf32, #tpu.memory_space<vmem>>, %arg11: memref<1x128xf32, #tpu.memory_space<vmem>>, %arg12: memref<128x128xf32, #tpu.memory_space<vmem>>, %arg13: memref<8x4xf32, #tpu.memory_space<vmem>>) attributes {dimension_semantics = [#tpu.dimension_semantics<parallel>], iteration_bounds = array<i64: 1>, scalar_prefetch = 0 : i64, scratch_operands = 0 : i64, tpu.core_type = #tpu.core_type<tc>, window_params = [{transform_indices = @transform_0, window_bounds = array<i64: 8, 16>}, {pipeline_mode = #tpu.pipeline_mode<synchronous>, transform_indices = @transform_1, window_bounds = array<i64: 16, 128>}, {pipeline_mode = #tpu.pipeline_mode<synchronous>, transform_indices = @transform_2, window_bounds = array<i64: 1, 128>}, {pipeline_mode = #tpu.pipeline_mode<synchronous>, transform_indices = @transform_3, window_bounds = array<i64: 1, 128>}, {pipeline_mode = #tpu.pipeline_mode<synchronous>, transform_indices = @transform_4, window_bounds = array<i64: 1, 128>}, {pipeline_mode = #tpu.pipeline_mode<synchronous>, transform_indices = @transform_5, window_bounds = array<i64: 128, 128>}, {pipeline_mode = #tpu.pipeline_mode<synchronous>, transform_indices = @transform_6, window_bounds = array<i64: 1, 128>}, {pipeline_mode = #tpu.pipeline_mode<synchronous>, transform_indices = @transform_7, window_bounds = array<i64: 1, 128>}, {pipeline_mode = #tpu.pipeline_mode<synchronous>, transform_indices = @transform_8, window_bounds = array<i64: 1, 128>}, {pipeline_mode = #tpu.pipeline_mode<synchronous>, transform_indices = @transform_9, window_bounds = array<i64: 128, 128>}, {pipeline_mode = #tpu.pipeline_mode<synchronous>, transform_indices = @transform_10, window_bounds = array<i64: 1, 128>}, {pipeline_mode = #tpu.pipeline_mode<synchronous>, transform_indices = @transform_11, window_bounds = array<i64: 128, 128>}, {transform_indices = @transform_12, window_bounds = array<i64: 8, 4>}]} {
    %c0 = arith.constant 0 : index
    %c0_0 = arith.constant 0 : index
    %0 = vector.load %arg12[%c0, %c0_0] : memref<128x128xf32, #tpu.memory_space<vmem>>, vector<128x128xf32>
    %c0_1 = arith.constant 0 : index
    %c0_2 = arith.constant 0 : index
    %1 = vector.load %arg1[%c0_1, %c0_2] : memref<8x16xf32, #tpu.memory_space<vmem>>, vector<8x16xf32>
    %c0_3 = arith.constant 0 : index
    %c0_4 = arith.constant 0 : index
    %2 = vector.load %arg2[%c0_3, %c0_4] : memref<16x128xf32, #tpu.memory_space<vmem>>, vector<16x128xf32>
    %cst = arith.constant dense<0.000000e+00> : vector<8x128xf32>
    %3 = tpu.matmul %1, %2, %cst {dimension_numbers = #tpu.dot_dimension_numbers<[1], [0], [0], [1], [0, 0, 1, 1], [], []>} : vector<8x16xf32>, vector<16x128xf32>, vector<8x128xf32> -> vector<8x128xf32>
    %c0_5 = arith.constant 0 : index
    %c0_6 = arith.constant 0 : index
    %4 = vector.load %arg3[%c0_5, %c0_6] : memref<1x128xf32, #tpu.memory_space<vmem>>, vector<1x128xf32>
    %5 = vector.broadcast %4 : vector<1x128xf32> to vector<8x128xf32>
    %6 = arith.addf %3, %5 : vector<8x128xf32>
    %c0_7 = arith.constant 0 : index
    %c0_8 = arith.constant 0 : index
    %7 = vector.load %arg4[%c0_7, %c0_8] : memref<1x128xf32, #tpu.memory_space<vmem>>, vector<1x128xf32>
    %c0_9 = arith.constant 0 : index
    %c0_10 = arith.constant 0 : index
    %8 = vector.load %arg5[%c0_9, %c0_10] : memref<1x128xf32, #tpu.memory_space<vmem>>, vector<1x128xf32>
    %cst_11 = arith.constant dense<0.000000e+00> : vector<8x128xf32>
    %9 = tpu.matmul %6, %0, %cst_11 {dimension_numbers = #tpu.dot_dimension_numbers<[1], [0], [0], [1], [0, 0, 1, 1], [], []>} : vector<8x128xf32>, vector<128x128xf32>, vector<8x128xf32> -> vector<8x128xf32>
    %10 = arith.mulf %6, %6 : vector<8x128xf32>
    %cst_12 = arith.constant dense<0.000000e+00> : vector<8x128xf32>
    %11 = tpu.matmul %10, %0, %cst_12 {dimension_numbers = #tpu.dot_dimension_numbers<[1], [0], [0], [1], [0, 0, 1, 1], [], []>} : vector<8x128xf32>, vector<128x128xf32>, vector<8x128xf32> -> vector<8x128xf32>
    %12 = arith.mulf %9, %9 : vector<8x128xf32>
    %13 = arith.subf %11, %12 : vector<8x128xf32>
    %cst_13 = arith.constant 9.99999974E-6 : f32
    %14 = vector.broadcast %cst_13 : f32 to vector<8x128xf32>
    %15 = arith.addf %13, %14 : vector<8x128xf32>
    %16 = math.rsqrt %15 : vector<8x128xf32>
    %17 = arith.subf %6, %9 : vector<8x128xf32>
    %18 = arith.mulf %17, %16 : vector<8x128xf32>
    %19 = vector.broadcast %7 : vector<1x128xf32> to vector<8x128xf32>
    %20 = arith.mulf %18, %19 : vector<8x128xf32>
    %21 = vector.broadcast %8 : vector<1x128xf32> to vector<8x128xf32>
    %22 = arith.addf %20, %21 : vector<8x128xf32>
    %cst_14 = arith.constant 0.000000e+00 : f32
    %23 = vector.broadcast %cst_14 : f32 to vector<8x128xf32>
    %24 = arith.maximumf %22, %23 : vector<8x128xf32>
    %c0_15 = arith.constant 0 : index
    %c0_16 = arith.constant 0 : index
    %25 = vector.load %arg6[%c0_15, %c0_16] : memref<128x128xf32, #tpu.memory_space<vmem>>, vector<128x128xf32>
    %cst_17 = arith.constant dense<0.000000e+00> : vector<8x128xf32>
    %26 = tpu.matmul %24, %25, %cst_17 {dimension_numbers = #tpu.dot_dimension_numbers<[1], [0], [0], [1], [0, 0, 1, 1], [], []>} : vector<8x128xf32>, vector<128x128xf32>, vector<8x128xf32> -> vector<8x128xf32>
    %c0_18 = arith.constant 0 : index
    %c0_19 = arith.constant 0 : index
    %27 = vector.load %arg7[%c0_18, %c0_19] : memref<1x128xf32, #tpu.memory_space<vmem>>, vector<1x128xf32>
    %28 = vector.broadcast %27 : vector<1x128xf32> to vector<8x128xf32>
    %29 = arith.addf %26, %28 : vector<8x128xf32>
    %c0_20 = arith.constant 0 : index
    %c0_21 = arith.constant 0 : index
    %30 = vector.load %arg8[%c0_20, %c0_21] : memref<1x128xf32, #tpu.memory_space<vmem>>, vector<1x128xf32>
    %c0_22 = arith.constant 0 : index
    %c0_23 = arith.constant 0 : index
    %31 = vector.load %arg9[%c0_22, %c0_23] : memref<1x128xf32, #tpu.memory_space<vmem>>, vector<1x128xf32>
    %cst_24 = arith.constant dense<0.000000e+00> : vector<8x128xf32>
    %32 = tpu.matmul %29, %0, %cst_24 {dimension_numbers = #tpu.dot_dimension_numbers<[1], [0], [0], [1], [0, 0, 1, 1], [], []>} : vector<8x128xf32>, vector<128x128xf32>, vector<8x128xf32> -> vector<8x128xf32>
    %33 = arith.mulf %29, %29 : vector<8x128xf32>
    %cst_25 = arith.constant dense<0.000000e+00> : vector<8x128xf32>
    %34 = tpu.matmul %33, %0, %cst_25 {dimension_numbers = #tpu.dot_dimension_numbers<[1], [0], [0], [1], [0, 0, 1, 1], [], []>} : vector<8x128xf32>, vector<128x128xf32>, vector<8x128xf32> -> vector<8x128xf32>
    %35 = arith.mulf %32, %32 : vector<8x128xf32>
    %36 = arith.subf %34, %35 : vector<8x128xf32>
    %cst_26 = arith.constant 9.99999974E-6 : f32
    %37 = vector.broadcast %cst_26 : f32 to vector<8x128xf32>
    %38 = arith.addf %36, %37 : vector<8x128xf32>
    %39 = math.rsqrt %38 : vector<8x128xf32>
    %40 = arith.subf %29, %32 : vector<8x128xf32>
    %41 = arith.mulf %40, %39 : vector<8x128xf32>
    %42 = vector.broadcast %30 : vector<1x128xf32> to vector<8x128xf32>
    %43 = arith.mulf %41, %42 : vector<8x128xf32>
    %44 = vector.broadcast %31 : vector<1x128xf32> to vector<8x128xf32>
    %45 = arith.addf %43, %44 : vector<8x128xf32>
    %cst_27 = arith.constant 0.000000e+00 : f32
    %46 = vector.broadcast %cst_27 : f32 to vector<8x128xf32>
    %47 = arith.maximumf %45, %46 : vector<8x128xf32>
    %c0_28 = arith.constant 0 : index
    %c0_29 = arith.constant 0 : index
    %48 = vector.load %arg10[%c0_28, %c0_29] : memref<128x128xf32, #tpu.memory_space<vmem>>, vector<128x128xf32>
    %cst_30 = arith.constant dense<0.000000e+00> : vector<8x128xf32>
    %49 = tpu.matmul %47, %48, %cst_30 {dimension_numbers = #tpu.dot_dimension_numbers<[1], [0], [0], [1], [0, 0, 1, 1], [], []>} : vector<8x128xf32>, vector<128x128xf32>, vector<8x128xf32> -> vector<8x128xf32>
    %c0_31 = arith.constant 0 : index
    %c0_32 = arith.constant 0 : index
    %50 = vector.load %arg11[%c0_31, %c0_32] : memref<1x128xf32, #tpu.memory_space<vmem>>, vector<1x128xf32>
    %51 = vector.broadcast %50 : vector<1x128xf32> to vector<8x128xf32>
    %52 = arith.addf %49, %51 : vector<8x128xf32>
    %53 = vector.extract_strided_slice %52 {offsets = [0, 0], sizes = [8, 4], strides = [1, 1]} : vector<8x128xf32> to vector<8x4xf32>
    %c0_33 = arith.constant 0 : index
    %c0_34 = arith.constant 0 : index
    %54 = vector.load %arg13[%c0_33, %c0_34] : memref<8x4xf32, #tpu.memory_space<vmem>>, vector<8x4xf32>
    tpu.vector_store %arg13[%c0_33, %c0_34], %53 {strides = array<i32>} : memref<8x4xf32, #tpu.memory_space<vmem>>, vector<8x4xf32>,
    return
  }
  func.func @transform_0(%arg0: i32) -> (i32, i32) {
    %c0_i32 = arith.constant 0 : i32
    %c0_i32_0 = arith.constant 0 : i32
    return %arg0, %c0_i32 : i32, i32
  }
  func.func @transform_1(%arg0: i32) -> (i32, i32) {
    %c0_i32 = arith.constant 0 : i32
    %c0_i32_0 = arith.constant 0 : i32
    %c0_i32_1 = arith.constant 0 : i32
    return %c0_i32, %c0_i32_0 : i32, i32
  }
  func.func @transform_2(%arg0: i32) -> (i32, i32) {
    %c0_i32 = arith.constant 0 : i32
    %c0_i32_0 = arith.constant 0 : i32
    %c0_i32_1 = arith.constant 0 : i32
    return %c0_i32, %c0_i32_0 : i32, i32
  }
  func.func @transform_3(%arg0: i32) -> (i32, i32) {
    %c0_i32 = arith.constant 0 : i32
    %c0_i32_0 = arith.constant 0 : i32
    %c0_i32_1 = arith.constant 0 : i32
    return %c0_i32, %c0_i32_0 : i32, i32
  }
  func.func @transform_4(%arg0: i32) -> (i32, i32) {
    %c0_i32 = arith.constant 0 : i32
    %c0_i32_0 = arith.constant 0 : i32
    %c0_i32_1 = arith.constant 0 : i32
    return %c0_i32, %c0_i32_0 : i32, i32
  }
  func.func @transform_5(%arg0: i32) -> (i32, i32) {
    %c0_i32 = arith.constant 0 : i32
    %c0_i32_0 = arith.constant 0 : i32
    %c0_i32_1 = arith.constant 0 : i32
    return %c0_i32, %c0_i32_0 : i32, i32
  }
  func.func @transform_6(%arg0: i32) -> (i32, i32) {
    %c0_i32 = arith.constant 0 : i32
    %c0_i32_0 = arith.constant 0 : i32
    %c0_i32_1 = arith.constant 0 : i32
    return %c0_i32, %c0_i32_0 : i32, i32
  }
  func.func @transform_7(%arg0: i32) -> (i32, i32) {
    %c0_i32 = arith.constant 0 : i32
    %c0_i32_0 = arith.constant 0 : i32
    %c0_i32_1 = arith.constant 0 : i32
    return %c0_i32, %c0_i32_0 : i32, i32
  }
  func.func @transform_8(%arg0: i32) -> (i32, i32) {
    %c0_i32 = arith.constant 0 : i32
    %c0_i32_0 = arith.constant 0 : i32
    %c0_i32_1 = arith.constant 0 : i32
    return %c0_i32, %c0_i32_0 : i32, i32
  }
  func.func @transform_9(%arg0: i32) -> (i32, i32) {
    %c0_i32 = arith.constant 0 : i32
    %c0_i32_0 = arith.constant 0 : i32
    %c0_i32_1 = arith.constant 0 : i32
    return %c0_i32, %c0_i32_0 : i32, i32
  }
  func.func @transform_10(%arg0: i32) -> (i32, i32) {
    %c0_i32 = arith.constant 0 : i32
    %c0_i32_0 = arith.constant 0 : i32
    %c0_i32_1 = arith.constant 0 : i32
    return %c0_i32, %c0_i32_0 : i32, i32
  }
  func.func @transform_11(%arg0: i32) -> (i32, i32) {
    %c0_i32 = arith.constant 0 : i32
    %c0_i32_0 = arith.constant 0 : i32
    %c0_i32_1 = arith.constant 0 : i32
    return %c0_i32, %c0_i32_0 : i32, i32
  }
  func.func @transform_12(%arg0: i32) -> (i32, i32) {
    %c0_i32 = arith.constant 0 : i32
    %c0_i32_0 = arith.constant 0 : i32
    return %arg0, %c0_i32 : i32, i32
  }
}

</mosaic_0001>

<bundles_post_ra>
// kernel: tpu_custom_call.1
= control target key start
LH: loop header
LB: loop body
LE: loop exit
PB: predicated region body
PF: predicated region fallthrough
CT: control target
= control target key end

     0   :  { %17 = vsyncpa [#allocation3], 0  ;;  %s655_s0 = inlined_call_operand.hbm [shape: f32[8,16], index: 0, kind: input, shape index: {}]   ;;  %s656_s1 = inlined_call_operand.hbm [shape: f32[16,128], index: 1, kind: input, shape index: {}]   ;;  %s657_s2 = inlined_call_operand.vmem [shape: f32[1,128], index: 2, kind: input, shape index: {}]   ;;  %s658_s3 = inlined_call_operand.vmem [shape: f32[1,128], index: 3, kind: input, shape index: {}]   ;;  %s659_s4 = inlined_call_operand.vmem [shape: f32[1,128], index: 4, kind: input, shape index: {}]   ;;  %s660_s5 = inlined_call_operand.hbm [shape: f32[128,128], index: 5, kind: input, shape index: {}]   ;;  %s661_s6 = inlined_call_operand.vmem [shape: f32[1,128], index: 6, kind: input, shape index: {}]   ;;  %s662_s7 = inlined_call_operand.vmem [shape: f32[1,128], index: 7, kind: input, shape index: {}]   ;;  %s663_s8 = inlined_call_operand.vmem [shape: f32[1,128], index: 8, kind: input, shape index: {}]   ;;  %s664_s9 = inlined_call_operand.hbm [shape: f32[128,128], index: 9, kind: input, shape index: {}]   ;;  %s665_s10 = inlined_call_operand.vmem [shape: f32[1,128], index: 10, kind: input, shape index: {}]   ;;  %s666_s11 = inlined_call_operand.hbm [shape: f32[128,128], index: 11, kind: input, shape index: {}]   ;;  %s667_s12 = inlined_call_operand.vmem [shape: f32[8,4], index: 12, kind: output, shape index: {}]  }
   0x1   :  { %18 = vsyncpa [#allocation5], 0  ;;  %s35_s23 = sshll.u32 %s656_s1, 4  ;;  %s36_s23 = int_to_ptr.hbm [resolvable:$true] %s35_s23 }
   0x2   :  { %19 = vsyncpa [#allocation8], 0  ;;  %s532_s24 = smov [#allocation4]   ;;  %s73_s28 = sshll.u32 %s664_s9, 4  ;;  %s74_s28 = int_to_ptr.hbm [resolvable:$true] %s73_s28 }
   0x3   :  { %s37_s25 = sshll.u32 %s532_s24, 4  ;;  %s533_s29 = smov 128   ;;  %s38_s25 = int_to_ptr.vmem [resolvable:$true] %s37_s25 }
   0x4   :  { %s534_s30 = smov 8   ;;  %s535_s13 = smov [#allocation7]  }
   0x5   :  { %43 = dma.hbm_to_vmem [thread:$0]  %s36_s23, 256, %s38_s25, [#allocation5], %s533_s29, %s533_s29, %s534_s30  }
   0x6   :  { %s75_s14 = sshll.u32 %s535_s13, 4  ;;  %s25_s17 = sshll.u32 %s655_s0, 4  ;;  %s76_s14 = int_to_ptr.vmem [resolvable:$true] %s75_s14  ;;  %s26_s17 = int_to_ptr.hbm [resolvable:$true] %s25_s17 }
   0x7   :  { %81 = dma.hbm_to_vmem [thread:$0]  %s74_s28, 2048, %s76_s14, [#allocation8], %s533_s29, %s533_s29, %s534_s30  }
   0x8   :  { %s54_s19 = sshll.u32 %s660_s5, 4  ;;  %s536_s20 = smov [#allocation2]   ;;  %s55_s19 = int_to_ptr.hbm [resolvable:$true] %s54_s19 }
   0x9   :  { %s27_s21 = sshll.u32 %s536_s20, 4  ;;  %s537_s9 = smov [#allocation6]   ;;  %s28_s21 = int_to_ptr.vmem [resolvable:$true] %s27_s21 }
   0xa   :  { %30 = dma.hbm_to_vmem [thread:$0]  %s26_s17, 128, %s28_s21, [#allocation3]  }
   0xb   :  { %s56_s22 = sshll.u32 %s537_s9, 4  ;;  %s88_s25 = sshll.u32 %s666_s11, 4  ;;  %s57_s22 = int_to_ptr.vmem [resolvable:$true] %s56_s22  ;;  %s89_s25 = int_to_ptr.hbm [resolvable:$true] %s88_s25 }
   0xc   :  { %62 = dma.hbm_to_vmem [thread:$0]  %s55_s19, 2048, %s57_s22, [#allocation5], %s533_s29, %s533_s29, %s534_s30  }
   0xd   :  { %s538_s0 = smov [#allocation9]  }
   0xe   :  { %s90_s26 = sshll.u32 %s538_s0, 4  ;;  %s91_s26 = int_to_ptr.vmem [resolvable:$true] %s90_s26 }
   0xf   :  { %96 = dma.hbm_to_vmem [thread:$0]  %s89_s25, 2048, %s91_s26, [#allocation8], %s533_s29, %s533_s29, %s534_s30  }
  0x10   :  { %526 = dma.done.wait [#allocation3], 128  }
  0x11   :  { %527 = vsyncadd [#allocation3], 4294967168 }
  0x12   :  { %528 = dma.done.wait [#allocation5], 2304  }
  0x13   :  { %529 = vsyncadd [#allocation5], 4294964992 }
  0x14   :  { %530 = dma.done.wait [#allocation8], 4096  }
  0x15   :  { %531 = vsyncadd [#allocation8], 4294963200  ;;  %v135_v0 = vld [vmem:[#allocation4 + $0x8] sm:$0xff]  ;;  %v134_v1 = vld [vmem:[#allocation4] sm:$0xff]  ;;  %vm140_vm0 = vcmask 130048   ;;  %vm378_vm7 = vcmask 31744  }
  0x16   :  { %158 = vmatpush.msra.mxu0 %v135_v0  ;;  %v133_v2 = vld [vmem:[#allocation2] sm:$0xff]  ;;  %v619_v3 = vld [vmem:[#allocation9 + $0x78] sm:$0xff]  ;;  %v621_v4 = vld [vmem:[#allocation9 + $0x70] sm:$0xff] }
  0x17   :  { %166 = vmatpush.msra.mxu1 %v619_v3  ;;  %187 = vmatpush.msra.mxu2 %v619_v3  ;;  %v130_v5 = vld [vmem:[#allocation9 + $0x68] sm:$0xff]  ;;  %v129_v6 = vld [vmem:[#allocation9 + $0x60] sm:$0xff]  ;;  %v128_v7 = vld [vmem:[#allocation9 + $0x58] sm:$0xff] }
  0x18   :  { %159 = vmatpush.msra.mxu0 %v134_v1  ;;  %v127_v8 = vld [vmem:[#allocation9 + $0x50] sm:$0xff]  ;;  %v126_v9 = vld [vmem:[#allocation9 + $0x48] sm:$0xff]  ;;  %v125_v10 = vld [vmem:[#allocation9 + $0x40] sm:$0xff] }
  0x19   :  { %387 = vmatmul.msk.f32.vlgmr.msra.gmra.mxu0 %vm140_vm0, %v133_v2  ;;  %167 = vmatpush.msra.mxu1 %v621_v4  ;;  %v124_v11 = vld [vmem:[#allocation9 + $0x38] sm:$0xff]  ;;  %v123_v12 = vld [vmem:[#allocation9 + $0x30] sm:$0xff]  ;;  %v122_v13 = vld [vmem:[#allocation9 + $0x28] sm:$0xff] }
  0x1a   :  { %188 = vmatpush.msra.mxu2 %v621_v4  ;;  %273 = vmatpush.msrb.mxu0 %v619_v3  ;;  %v121_v14 = vld [vmem:[#allocation9 + $0x20] sm:$0xff]  ;;  %v120_v15 = vld [vmem:[#allocation9 + $0x18] sm:$0xff]  ;;  %v119_v16 = vld [vmem:[#allocation9 + $0x10] sm:$0xff] }
  0x1b   :  { %168 = vmatpush.msra.mxu1 %v130_v5  ;;  %v118_v17 = vld [vmem:[#allocation9 + $0x8] sm:$0xff]  ;;  %v117_v18 = vld [vmem:[#allocation9] sm:$0xff]  ;;  %v246_v23 = vld [vmem:[#allocation6 + $0x78] sm:$0xff] }
  0x1c   :  { %189 = vmatpush.msra.mxu2 %v130_v5  ;;  %274 = vmatpush.msrb.mxu0 %v621_v4  ;;  %v395_v19 = vld [vmem:[%s657_s2] ss:$0 sm:$0xff]  ;;  %v245_v24 = vld [vmem:[#allocation6 + $0x70] sm:$0xff]  ;;  %v243_v26 = vld [vmem:[#allocation6 + $0x60] sm:$0xff] }
  0x1d   :  { %169 = vmatpush.msra.mxu1 %v129_v6  ;;  %251 = vmatpush.msra.mxu3 %v246_v23  ;;  %v244_v25 = vld [vmem:[#allocation6 + $0x68] sm:$0xff]  ;;  %v242_v27 = vld [vmem:[#allocation6 + $0x58] sm:$0xff]  ;;  %v241_v28 = vld [vmem:[#allocation6 + $0x50] sm:$0xff] }
  0x1e   :  { %190 = vmatpush.msra.mxu2 %v129_v6  ;;  %275 = vmatpush.msrb.mxu0 %v130_v5  ;;  %v240_v29 = vld [vmem:[#allocation6 + $0x48] sm:$0xff]  ;;  %v239_v30 = vld [vmem:[#allocation6 + $0x40] sm:$0xff]  ;;  %v238_v31 = vld [vmem:[#allocation6 + $0x38] sm:$0xff] }
  0x1f   :  { %170 = vmatpush.msra.mxu1 %v128_v7  ;;  %252 = vmatpush.msra.mxu3 %v245_v24  ;;  %v237_v32 = vld [vmem:[#allocation6 + $0x30] sm:$0xff]  ;;  %v236_v33 = vld [vmem:[#allocation6 + $0x28] sm:$0xff]  ;;  %v235_v34 = vld [vmem:[#allocation6 + $0x20] sm:$0xff] }
  0x20   :  { %191 = vmatpush.msra.mxu2 %v128_v7  ;;  %276 = vmatpush.msrb.mxu0 %v129_v6  ;;  %v234_v35 = vld [vmem:[#allocation6 + $0x18] sm:$0xff]  ;;  %v233_v36 = vld [vmem:[#allocation6 + $0x10] sm:$0xff]  ;;  %v232_v37 = vld [vmem:[#allocation6 + $0x8] sm:$0xff] }
  0x21   :  { %171 = vmatpush.msra.mxu1 %v127_v8  ;;  %253 = vmatpush.msra.mxu3 %v244_v25  ;;  %v231_v38 = vld [vmem:[#allocation6] sm:$0xff]  ;;  %v396_v51 = vld [vmem:[%s658_s3] ss:$0 sm:$0xff]  ;;  %v353_v62 = vld [vmem:[#allocation7 + $0x78] sm:$0xff] }
  0x22   :  { %192 = vmatpush.msra.mxu2 %v127_v8  ;;  %277 = vmatpush.msrb.mxu0 %v128_v7  ;;  %v397_v54 = vld [vmem:[%s659_s4] ss:$0 sm:$0xff]  ;;  %v352_v63 = vld [vmem:[#allocation7 + $0x70] sm:$0xff]  ;;  %v350_v1 = vld [vmem:[#allocation7 + $0x60] sm:$0xff] }
  0x23   :  { %172 = vmatpush.msra.mxu1 %v126_v9  ;;  %254 = vmatpush.msra.mxu3 %v243_v26  ;;  %v398_v58 = vld [vmem:[%s661_s6] ss:$0 sm:$0xff]  ;;  %v349_v2 = vld [vmem:[#allocation7 + $0x58] sm:$0xff] }
  0x24   :  { %193 = vmatpush.msra.mxu2 %v126_v9  ;;  %278 = vmatpush.msrb.mxu0 %v127_v8  ;;  %v351_v0 = vld [vmem:[#allocation7 + $0x68] sm:$0xff] }
  0x25   :  { %173 = vmatpush.msra.mxu1 %v125_v10  ;;  %255 = vmatpush.msra.mxu3 %v242_v27  ;;  %v399_v26 = vld [vmem:[%s662_s7] ss:$0 sm:$0xff] }
  0x26   :  { %194 = vmatpush.msra.mxu2 %v125_v10  ;;  %279 = vmatpush.msrb.mxu0 %v126_v9 }
  0x27   :  { %174 = vmatpush.msra.mxu1 %v124_v11  ;;  %256 = vmatpush.msra.mxu3 %v241_v28 }
  0x28   :  { %195 = vmatpush.msra.mxu2 %v124_v11  ;;  %280 = vmatpush.msrb.mxu0 %v125_v10 }
  0x29   :  { %175 = vmatpush.msra.mxu1 %v123_v12  ;;  %257 = vmatpush.msra.mxu3 %v240_v29  ;;  %v400_v29 = vld [vmem:[%s663_s8] ss:$0 sm:$0xff] }
  0x2a   :  { %196 = vmatpush.msra.mxu2 %v123_v12  ;;  %281 = vmatpush.msrb.mxu0 %v124_v11 }
  0x2b   :  { %176 = vmatpush.msra.mxu1 %v122_v13  ;;  %258 = vmatpush.msra.mxu3 %v239_v30 }
  0x2c   :  { %197 = vmatpush.msra.mxu2 %v122_v13  ;;  %282 = vmatpush.msrb.mxu0 %v123_v12 }
  0x2d   :  { %177 = vmatpush.msra.mxu1 %v121_v14  ;;  %259 = vmatpush.msra.mxu3 %v238_v31 }
  0x2e   :  { %198 = vmatpush.msra.mxu2 %v121_v14  ;;  %283 = vmatpush.msrb.mxu0 %v122_v13 }
  0x2f   :  { %178 = vmatpush.msra.mxu1 %v120_v15  ;;  %260 = vmatpush.msra.mxu3 %v237_v32 }
  0x30   :  { %199 = vmatpush.msra.mxu2 %v120_v15  ;;  %284 = vmatpush.msrb.mxu0 %v121_v14 }
  0x31   :  { %179 = vmatpush.msra.mxu1 %v119_v16  ;;  %261 = vmatpush.msra.mxu3 %v236_v33  ;;  %v401_v33 = vld [vmem:[%s665_s10] ss:$0 sm:$0xff] }
  0x32   :  { %200 = vmatpush.msra.mxu2 %v119_v16  ;;  %285 = vmatpush.msrb.mxu0 %v120_v15 }
  0x33   :  { %180 = vmatpush.msra.mxu1 %v118_v17  ;;  %262 = vmatpush.msra.mxu3 %v235_v34 }
  0x34   :  { %286 = vmatpush.msrb.mxu0 %v119_v16  ;;  %201 = vmatpush.msra.mxu2 %v118_v17 }
  0x35   :  { %181 = vmatpush.msra.mxu1 %v117_v18  ;;  %263 = vmatpush.msra.mxu3 %v234_v35 }
  0x36   :  { %287 = vmatpush.msrb.mxu0 %v118_v17  ;;  %202 = vmatpush.msra.mxu2 %v117_v18 }
  0x37   :  { %294 = vmatpush.msrb.mxu1 %v619_v3  ;;  %264 = vmatpush.msra.mxu3 %v233_v36  ;;  %v348_v3 = vld [vmem:[#allocation7 + $0x50] sm:$0xff] }
  0x38   :  { %288 = vmatpush.msrb.mxu0 %v117_v18  ;;  %358 = vmatpush.msrb.mxu2 %v353_v62 }
  0x39   :  { %295 = vmatpush.msrb.mxu1 %v621_v4  ;;  %265 = vmatpush.msra.mxu3 %v232_v37  ;;  %v347_v4 = vld [vmem:[#allocation7 + $0x48] sm:$0xff] }
  0x3a   :  { %359 = vmatpush.msrb.mxu2 %v352_v63 }
  0x3b   :  { %296 = vmatpush.msrb.mxu1 %v130_v5  ;;  %266 = vmatpush.msra.mxu3 %v231_v38  ;;  %v346_v5 = vld [vmem:[#allocation7 + $0x40] sm:$0xff] }
  0x3c   :  { %360 = vmatpush.msrb.mxu2 %v351_v0 }
  0x3d   :  { %297 = vmatpush.msrb.mxu1 %v129_v6  ;;  %v345_v6 = vld [vmem:[#allocation7 + $0x38] sm:$0xff] }
  0x3e   :  { %361 = vmatpush.msrb.mxu2 %v350_v1 }
  0x3f   :  { %298 = vmatpush.msrb.mxu1 %v128_v7  ;;  %v344_v7 = vld [vmem:[#allocation7 + $0x30] sm:$0xff] }
  0x40   :  { %362 = vmatpush.msrb.mxu2 %v349_v2 }
  0x41   :  { %299 = vmatpush.msrb.mxu1 %v127_v8  ;;  %v343_v8 = vld [vmem:[#allocation7 + $0x28] sm:$0xff] }
  0x42   :  { %363 = vmatpush.msrb.mxu2 %v348_v3 }
  0x43   :  { %300 = vmatpush.msrb.mxu1 %v126_v9  ;;  %v342_v9 = vld [vmem:[#allocation7 + $0x20] sm:$0xff] }
  0x44   :  { %364 = vmatpush.msrb.mxu2 %v347_v4 }
  0x45   :  { %301 = vmatpush.msrb.mxu1 %v125_v10  ;;  %v341_v10 = vld [vmem:[#allocation7 + $0x18] sm:$0xff] }
  0x46   :  { %365 = vmatpush.msrb.mxu2 %v346_v5 }
  0x47   :  { %302 = vmatpush.msrb.mxu1 %v124_v11  ;;  %v340_v11 = vld [vmem:[#allocation7 + $0x10] sm:$0xff] }
  0x48   :  { %366 = vmatpush.msrb.mxu2 %v345_v6 }
  0x49   :  { %303 = vmatpush.msrb.mxu1 %v123_v12  ;;  %v339_v12 = vld [vmem:[#allocation7 + $0x8] sm:$0xff] }
  0x4a   :  { %367 = vmatpush.msrb.mxu2 %v344_v7 }
  0x4b   :  { %304 = vmatpush.msrb.mxu1 %v122_v13  ;;  %v338_v13 = vld [vmem:[#allocation7] sm:$0xff] }
  0x4c   :  { %368 = vmatpush.msrb.mxu2 %v343_v8 }
  0x4d   :  { %305 = vmatpush.msrb.mxu1 %v121_v14 }
  0x4e   :  { %369 = vmatpush.msrb.mxu2 %v342_v9 }
  0x4f   :  { %306 = vmatpush.msrb.mxu1 %v120_v15 }
  0x50   :  { %370 = vmatpush.msrb.mxu2 %v341_v10 }
  0x51   :  { %307 = vmatpush.msrb.mxu1 %v119_v16 }
  0x52   :  { %371 = vmatpush.msrb.mxu2 %v340_v11 }
  0x53   :  { %308 = vmatpush.msrb.mxu1 %v118_v17 }
  0x54   :  { %372 = vmatpush.msrb.mxu2 %v339_v12 }
  0x55   :  { %309 = vmatpush.msrb.mxu1 %v117_v18 }
  0x56   :  { %373 = vmatpush.msrb.mxu2 %v338_v13 }
  0x96   :  { %v161_v20 = vpop.f32.mrf.mxu0 }
  0x97   :  { %v162_v21 = vadd.f32 %v395_v19, %v161_v20 }
  0x99   :  { %182 = vmatmul.f32.vlgmr.msra.gmra.mxu1 %v162_v21  ;;  %v186_v22 = vmul.f32 %v162_v21, %v162_v21 }
  0x9b   :  { %203 = vmatmul.f32.vlgmr.msra.gmra.mxu2 %v186_v22 }
 0x116   :  { %v183_v39 = vpop.f32.mrf.mxu1 }
 0x117   :  { %v207_v40 = vmul.f32 %v183_v39, %v183_v39  ;;  %v220_v50 = vsub.f32 %v162_v21, %v183_v39 }
 0x11e   :  { %v204_v41 = vpop.f32.mrf.mxu2 }
 0x11f   :  { %v208_v42 = vsub.f32 %v204_v41, %v207_v40 }
 0x121   :  { %v209_v43 = vadd.f32 1e-05, %v208_v42 }
 0x123   :  { %402 = vrsqrt.f32 %v209_v43  ;;  %vm216_vm2 = vweird.f32 %v209_v43 }
 0x129   :  { %v403_v44 = vpop.eup %402 }
 0x12a   :  { %v211_v45 = vmul.f32 %v403_v44, %v209_v43  ;;  %vm217_vm1 = vweird.f32 %v403_v44 }
 0x12b   :  { %vm218_vm3 = vmor %vm216_vm2, %vm217_vm1 }
 0x12c   :  { %v212_v46 = vmul.f32 %v403_v44, %v211_v45 }
 0x12e   :  { %v213_v47 = vmul.f32 0.5, %v212_v46 }
 0x130   :  { %v214_v48 = vsub.f32 1.5, %v213_v47 }
 0x132   :  { %v215_v49 = vmul.f32 %v403_v44, %v214_v48 }
 0x134   :  { %v219_v52 = vsel %vm218_vm3, %v403_v44, %v215_v49 }
 0x135   :  { %v221_v53 = vmul.f32 %v220_v50, %v219_v52 }
 0x137   :  { %v225_v55 = vmul.f32 %v396_v51, %v221_v53 }
 0x139   :  { %v229_v56 = vadd.f32 %v397_v54, %v225_v55 }
 0x13b   :  { %v230_v57 = vmax.f32 %v229_v56, 0.0 }
 0x13d   :  { %267 = vmatmul.f32.vlgmr.msra.gmra.mxu3 %v230_v57 }
 0x1c0   :  { %v268_v59 = vpop.f32.mrf.mxu3 }
 0x1c1   :  { %v269_v60 = vadd.f32 %v398_v58, %v268_v59 }
 0x1c3   :  { %289 = vmatmul.f32.vlgmr.msrb.gmra.mxu0 %v269_v60  ;;  %v293_v61 = vmul.f32 %v269_v60, %v269_v60 }
 0x1c5   :  { %310 = vmatmul.f32.vlgmr.msrb.gmra.mxu1 %v293_v61 }
 0x240   :  { %v290_v14 = vpop.f32.mrf.mxu0 }
 0x241   :  { %v314_v15 = vmul.f32 %v290_v14, %v290_v14  ;;  %v327_v25 = vsub.f32 %v269_v60, %v290_v14 }
 0x242   :  { %v311_v16 = vpop.f32.mrf.mxu1 }
 0x243   :  { %v315_v17 = vsub.f32 %v311_v16, %v314_v15 }
 0x245   :  { %v316_v18 = vadd.f32 1e-05, %v315_v17 }
 0x247   :  { %404 = vrsqrt.f32 %v316_v18  ;;  %vm323_vm5 = vweird.f32 %v316_v18 }
 0x24d   :  { %v405_v19 = vpop.eup %404 }
 0x24e   :  { %v318_v20 = vmul.f32 %v405_v19, %v316_v18  ;;  %vm324_vm4 = vweird.f32 %v405_v19 }
 0x24f   :  { %vm325_vm6 = vmor %vm323_vm5, %vm324_vm4 }
 0x250   :  { %v319_v21 = vmul.f32 %v405_v19, %v318_v20 }
 0x252   :  { %v320_v22 = vmul.f32 0.5, %v319_v21 }
 0x254   :  { %v321_v23 = vsub.f32 1.5, %v320_v22 }
 0x256   :  { %v322_v24 = vmul.f32 %v405_v19, %v321_v23 }
 0x258   :  { %v326_v27 = vsel %vm325_vm6, %v405_v19, %v322_v24 }
 0x259   :  { %v328_v28 = vmul.f32 %v327_v25, %v326_v27 }
 0x25b   :  { %v332_v30 = vmul.f32 %v399_v26, %v328_v28 }
 0x25d   :  { %v336_v31 = vadd.f32 %v400_v29, %v332_v30 }
 0x25f   :  { %v337_v32 = vmax.f32 %v336_v31, 0.0 }
 0x261   :  { %374 = vmatmul.f32.vlgmr.msrb.gmra.mxu2 %v337_v32 }
 0x2e4   :  { %v375_v34 = vpop.f32.mrf.mxu2 }
 0x2e5   :  { %v376_v35 = vadd.f32 %v401_v33, %v375_v34 }
 0x2e7   :  { %379 = vst.msk [vmem:[%s667_s12] sm:$0xff] %vm378_vm7, %v376_v35 }
 0x2e8   :  { %384 = vsyncpa [#allocation3], 1 }
 0x2e9   :  { %385 = vsyncpa [#allocation5], 1 }
 0x2ea   :  { %386 = vsyncpa [#allocation8], 1 }

</bundles_post_ra>
